<compile_context>
chip_gen: v7x
topology: tpu7x:2x2x1
jax: 0.10.0
libtpu: 0.0.40
codegen_flags: <defaults>
</compile_context>

<pallas_src>
import functools

import jax
import jax.numpy as jnp
from jax.experimental import pallas as pl
from jax.experimental.pallas import tpu as pltpu

_LANES = 128


def _pow_gamma(om, gamma):
    """(1 - pt) ** gamma, specialized at trace time."""
    g = float(gamma)
    if g == int(g) and 0 <= int(g) <= 8:
        e = int(g)
        if e == 0:
            return jnp.ones_like(om)
        w = None                     # seed lazily: gamma=2 emits exactly om*om
        p = om
        while True:                  # trace-time binary exponentiation
            if e & 1:
                w = p if w is None else w * p
            e >>= 1
            if not e:
                break
            p = p * p
        return w
    return jnp.power(jnp.maximum(om, 0.0), g)   # clamp avoids NaN near pt -> 1


def _focal_unnormalized(x, t, gamma):
    """Element-wise (1 - pt)**gamma * bce in f32 (alpha and 1/n folded outside)."""
    x = x.astype(jnp.float32)
    t = t.astype(jnp.float32)
    # Numerically-stable BCE with logits (matches torch.nn.BCEWithLogitsLoss):
    #   bce = max(x, 0) - x*t + log1p(exp(-|x|))
    bce = jnp.maximum(x, 0.0) - x * t + jnp.log1p(jnp.exp(-jnp.abs(x)))
    pt = jnp.exp(-bce)
    return _pow_gamma(1.0 - pt, gamma) * bce


def _focal_loss_kernel(x_ref, t_ref, o_ref, *, gamma, rows_valid, tile_rows,
                       chunk_rows, acc_rows):
    i = pl.program_id(0)
    num_chunks = tile_rows // chunk_rows

    def chunk_partial(c, apply_mask):
        if num_chunks == 1:
            x = x_ref[...]
            t = t_ref[...]
        else:
            start = pl.multiple_of(c * chunk_rows, chunk_rows)
            x = x_ref[pl.ds(start, chunk_rows), :]
            t = t_ref[pl.ds(start, chunk_rows), :]
        f = _focal_unnormalized(x, t, gamma)
        if apply_mask:
            # Only the (possibly ragged) last row-tile is masked; columns are
            # always valid because the wrapper feeds a 128-aligned prefix.
            rid = jax.lax.broadcasted_iota(jnp.int32, f.shape, 0)
            row = i * tile_rows + c * chunk_rows + rid
            f = jnp.where(row < rows_valid, f, 0.0)
        if acc_rows == 8:
            # (chunk_rows,128) -> (chunk_rows//8, 8, 128) -> (8, 128):
            # pure vreg adds, no cross-lane reduction in the kernel.
            return f.reshape(chunk_rows // 8, 8, _LANES).sum(axis=0)
        return jnp.sum(f, axis=0, keepdims=True)       # (1, 128)

    def tile_partial(apply_mask):
        if num_chunks == 1:
            return chunk_partial(0, apply_mask)
        init = jnp.zeros((acc_rows, _LANES), jnp.float32)
        return jax.lax.fori_loop(
            0, num_chunks,
            lambda c, acc: acc + chunk_partial(c, apply_mask),
            init)

    if rows_valid % tile_rows == 0:
        # All tiles full: no masking anywhere.
        o_ref[0] = tile_partial(False)
    else:
        last = pl.num_programs(0) - 1

        @pl.when(i != last)
        def _interior():
            o_ref[0] = tile_partial(False)

        @pl.when(i == last)
        def _ragged_last():
            o_ref[0] = tile_partial(True)


def _pick_tiling(rows, block_rows):
    if rows <= block_rows:
        tile_rows = rows
    else:
        tile_rows = max(8, (block_rows // 8) * 8)
    if tile_rows % 8 == 0:
        acc_rows = 8
        chunk_rows = tile_rows
        if tile_rows > 512:
            for cand in range(512, 0, -8):
                if tile_rows % cand == 0:
                    chunk_rows = cand
                    break
    else:
        acc_rows = 1
        chunk_rows = tile_rows
    return tile_rows, chunk_rows, acc_rows


def focal_loss(inputs, targets, *, alpha=0.25, gamma=2.0, block_rows=4096):
    """Pallas TPU focal loss.  inputs/targets: (batch,) -> scalar f32."""
    assert inputs.shape == targets.shape and inputs.ndim == 1
    n = inputs.shape[0]
    rows = n // _LANES
    aligned = rows * _LANES
    tail = n - aligned

    total = jnp.zeros((), jnp.float32)

    if rows > 0:
        if tail:
            x2 = inputs[:aligned].reshape(rows, _LANES)
            t2 = targets[:aligned].reshape(rows, _LANES)
        else:
            x2 = inputs.reshape(rows, _LANES)      # free bitcast, no HBM copy
            t2 = targets.reshape(rows, _LANES)

        tile_rows, chunk_rows, acc_rows = _pick_tiling(rows, int(block_rows))
        grid = pl.cdiv(rows, tile_rows)

        kernel = functools.partial(
            _focal_loss_kernel,
            gamma=float(gamma),
            rows_valid=rows,
            tile_rows=tile_rows,
            chunk_rows=chunk_rows,
            acc_rows=acc_rows,
        )
        partials = pl.pallas_call(
            kernel,
            out_shape=jax.ShapeDtypeStruct((grid, acc_rows, _LANES), jnp.float32),
            grid_spec=pltpu.PrefetchScalarGridSpec(
                num_scalar_prefetch=0,
                grid=(grid,),
                in_specs=[
                    pl.BlockSpec((tile_rows, _LANES), lambda i: (i, 0)),
                    pl.BlockSpec((tile_rows, _LANES), lambda i: (i, 0)),
                ],
                out_specs=pl.BlockSpec((1, acc_rows, _LANES),
                                       lambda i: (i, 0, 0)),
            ),
            compiler_params=pltpu.CompilerParams(
                # Each grid step owns its output block -> fully parallel
                # (lets v7x use both TensorCores; neutral on v5e/v6e).
                dimension_semantics=("parallel",)),
        )(x2, t2)
        total = total + jnp.sum(partials)

    if tail:
        # <=127 leftover elements: negligible wrapper-side work, no pad copy.
        total = total + jnp.sum(
            _focal_unnormalized(inputs[aligned:], targets[aligned:], gamma))

    # alpha and 1/n folded into a single scalar multiply.
    return (float(alpha) / n) * total


def _focal_loss_ref(inputs, targets, alpha=0.25, gamma=2.0):
    x = inputs.astype(jnp.float32)
    t = targets.astype(jnp.float32)
    bce = jnp.maximum(x, 0.0) - x * t + jnp.log1p(jnp.exp(-jnp.abs(x)))
    pt = jnp.exp(-bce)
    return jnp.mean(alpha * (1.0 - pt) ** gamma * bce)


if __name__ == "__main__":
    key = jax.random.PRNGKey(0)
    k1, k2, k3, k4, k5, k6, k7, k8 = jax.random.split(key, 8)

    # Case 1: small 1-D batch, not a multiple of 128 -> exercises the
    # wrapper-side tail path and a tiny single-tile kernel.
    batch = 200
    logits = jax.random.normal(k1, (batch,), dtype=jnp.float32)
    labels = jax.random.bernoulli(k2, p=0.3, shape=(batch,)).astype(jnp.float32)
    loss = jax.block_until_ready(focal_loss(logits, labels, alpha=0.25, gamma=2.0))
    ref = _focal_loss_ref(logits, labels, alpha=0.25, gamma=2.0)
    assert jnp.allclose(loss, ref, rtol=1e-5, atol=1e-6), (loss, ref)

    # Case 2: multi-tile grid with a ragged last row-tile (rows=40, tile=24)
    # -> exercises per-step partial outputs + last-tile-only masking + tail.
    batch2 = 5157
    logits2 = jax.random.normal(k3, (batch2,), dtype=jnp.float32)
    labels2 = jax.random.bernoulli(k4, p=0.3, shape=(batch2,)).astype(jnp.float32)
    loss2 = jax.block_until_ready(
        focal_loss(logits2, labels2, alpha=0.25, gamma=2.0, block_rows=24))
    ref2 = _focal_loss_ref(logits2, labels2, alpha=0.25, gamma=2.0)
    assert jnp.allclose(loss2, ref2, rtol=1e-5, atol=1e-6), (loss2, ref2)

    # Case 3: bf16 inputs/targets passed straight into the kernel (cast to f32
    # inside the body), 128-aligned so the reshape is a free bitcast.
    batch3 = 4096
    logits3 = jax.random.normal(k5, (batch3,), dtype=jnp.float32).astype(jnp.bfloat16)
    labels3 = jax.random.bernoulli(k6, p=0.3, shape=(batch3,)).astype(jnp.bfloat16)
    loss3 = jax.block_until_ready(focal_loss(logits3, labels3, alpha=0.25, gamma=2.0))
    ref3 = _focal_loss_ref(logits3, labels3, alpha=0.25, gamma=2.0)
    assert jnp.allclose(loss3, ref3, rtol=1e-5, atol=1e-6), (loss3, ref3)

    # Case 4: larger batch (rows=1024) -> exercises the in-tile chunked
    # fori_loop accumulation path (chunk_rows=512) plus the ragged tail.
    batch4 = 128 * 1024 + 50
    logits4 = jax.random.normal(k7, (batch4,), dtype=jnp.float32)
    labels4 = jax.random.bernoulli(k8, p=0.3, shape=(batch4,)).astype(jnp.float32)
    loss4 = jax.block_until_ready(focal_loss(logits4, labels4, alpha=0.25, gamma=2.0))
    ref4 = _focal_loss_ref(logits4, labels4, alpha=0.25, gamma=2.0)
    assert jnp.allclose(loss4, ref4, rtol=1e-5, atol=1e-6), (loss4, ref4)

    print("KERNEL_OK")
</pallas_src>

<mosaic_0001>
module attributes {stable_mosaic.version = 11 : i64} {
  func.func @_focal_loss_kernel(%arg0: i32, %arg1: memref<1x128xf32, #tpu.memory_space<vmem>>, %arg2: memref<1x128xf32, #tpu.memory_space<vmem>>, %arg3: memref<1x1x128xf32, #tpu.memory_space<vmem>>) attributes {dimension_semantics = [#tpu.dimension_semantics<parallel>], iteration_bounds = array<i64: 1>, scalar_prefetch = 0 : i64, scratch_operands = 0 : i64, tpu.core_type = #tpu.core_type<tc>, window_params = [{transform_indices = @transform_0, window_bounds = array<i64: 1, 128>}, {transform_indices = @transform_1, window_bounds = array<i64: 1, 128>}, {transform_indices = @transform_2, window_bounds = array<i64: 1, 1, 128>}]} {
    %c0 = arith.constant 0 : index
    %c0_0 = arith.constant 0 : index
    %0 = vector.load %arg1[%c0, %c0_0] : memref<1x128xf32, #tpu.memory_space<vmem>>, vector<1x128xf32>
    %c0_1 = arith.constant 0 : index
    %c0_2 = arith.constant 0 : index
    %1 = vector.load %arg2[%c0_1, %c0_2] : memref<1x128xf32, #tpu.memory_space<vmem>>, vector<1x128xf32>
    %cst = arith.constant 0.000000e+00 : f32
    %2 = vector.broadcast %cst : f32 to vector<1x128xf32>
    %3 = arith.maximumf %0, %2 : vector<1x128xf32>
    %4 = arith.mulf %0, %1 : vector<1x128xf32>
    %5 = arith.subf %3, %4 : vector<1x128xf32>
    %6 = math.absf %0 : vector<1x128xf32>
    %cst_3 = arith.constant 0.000000e+00 : f32
    %7 = vector.broadcast %cst_3 : f32 to vector<1x128xf32>
    %8 = arith.subf %7, %6 : vector<1x128xf32>
    %9 = math.exp %8 : vector<1x128xf32>
    %10 = math.log1p %9 : vector<1x128xf32>
    %11 = arith.addf %5, %10 : vector<1x128xf32>
    %cst_4 = arith.constant 0.000000e+00 : f32
    %12 = vector.broadcast %cst_4 : f32 to vector<1x128xf32>
    %13 = arith.subf %12, %11 : vector<1x128xf32>
    %14 = math.exp %13 : vector<1x128xf32>
    %cst_5 = arith.constant 1.000000e+00 : f32
    %15 = vector.broadcast %cst_5 : f32 to vector<1x128xf32>
    %16 = arith.subf %15, %14 : vector<1x128xf32>
    %17 = arith.mulf %16, %16 : vector<1x128xf32>
    %18 = arith.mulf %17, %11 : vector<1x128xf32>
    %cst_6 = arith.constant dense<0.000000e+00> : vector<128xf32>
    %19 = vector.multi_reduction <add>, %18, %cst_6 [0] : vector<1x128xf32> to vector<128xf32>
    %20 = vector.shape_cast %19 : vector<128xf32> to vector<1x128xf32>
    %c0_7 = arith.constant 0 : index
    %c0_8 = arith.constant 0 : index
    %c0_9 = arith.constant 0 : index
    %21 = vector.load %arg3[%c0_7, %c0_8, %c0_9] : memref<1x1x128xf32, #tpu.memory_space<vmem>>, vector<1x1x128xf32>
    %22 = vector.shape_cast %21 : vector<1x1x128xf32> to vector<1x128xf32>
    %23 = vector.shape_cast %20 : vector<1x128xf32> to vector<1x1x128xf32>
    tpu.vector_store %arg3[%c0_7, %c0_8, %c0_9], %23 {strides = array<i32>} : memref<1x1x128xf32, #tpu.memory_space<vmem>>, vector<1x1x128xf32>,
    return
  }
  func.func @transform_0(%arg0: i32) -> (i32, i32) {
    %c0_i32 = arith.constant 0 : i32
    %c0_i32_0 = arith.constant 0 : i32
    return %arg0, %c0_i32 : i32, i32
  }
  func.func @transform_1(%arg0: i32) -> (i32, i32) {
    %c0_i32 = arith.constant 0 : i32
    %c0_i32_0 = arith.constant 0 : i32
    return %arg0, %c0_i32 : i32, i32
  }
  func.func @transform_2(%arg0: i32) -> (i32, i32, i32) {
    %c0_i32 = arith.constant 0 : i32
    %c0_i32_0 = arith.constant 0 : i32
    %c0_i32_1 = arith.constant 0 : i32
    return %arg0, %c0_i32, %c0_i32_0 : i32, i32, i32
  }
}

</mosaic_0001>

<bundles_post_ra>
// kernel: tpu_custom_call.1
= control target key start
LH: loop header
LB: loop body
LE: loop exit
PB: predicated region body
PF: predicated region fallthrough
CT: control target
= control target key end

     0   :  { %7 = vsyncpa [#allocation3], 0  ;;  %s166_s0 = inlined_call_operand.hbm [shape: f32[1,128], index: 0, kind: input, shape index: {}]   ;;  %s167_s1 = inlined_call_operand.vmem [shape: f32[1,128], index: 1, kind: input, shape index: {}]   ;;  %s168_s2 = inlined_call_operand.hbm [shape: f32[1,1,128], index: 2, kind: output, shape index: {}]  }
   0x1   :  { %8 = vsyncpa [#allocation4], 0  ;;  %s122_s9 = smov [#allocation2]   ;;  %s74_s13 = scalar_lea.hbm %s166_s0, 16 }
   0x2   :  { %s15_s10 = sshll.u32 %s122_s9, 4  ;;  %p75_p0 = scmp.ne.s32.totalorder %s166_s0, %s74_s13  ;;  %s16_s10 = int_to_ptr.vmem [resolvable:$true] %s15_s10 }
   0x3   :  { %p78_p1 = scmp.lt.u32.totalorder %s74_s13, %s166_s0 }
   0x5   :  { %p80_p2 = pnand %p78_p1, %p75_p0 }
   0x7   :  { %83 = shalt.err (!%p80_p2)
}
   0x8   :  { %s84_s18 = scalar_lea.vmem %s16_s10, 16  ;;  %s88_s19 = scalar_lea.vmem %s16_s10, 32 }
   0x9   :  { %p85_p3 = scmp.ne.s32.totalorder %s16_s10, %s84_s18  ;;  %p89_p4 = scmp.lt.s32.totalorder %s16_s10, %s16_s10 }
   0xa   :  { %p90_p5 = scmp.lt.s32.totalorder %s88_s19, %s84_s18 }
   0xc   :  { %p91_p6 = por %p90_p5, %p89_p4 }
   0xe   :  { %p92_p7 = pnand %p91_p6, %p85_p3 }
  0x10   :  { %95 = shalt.err (!%p92_p7)
}
  0x11   :  { %18 = dma.hbm_to_vmem [thread:$0]  %s166_s0, 16, %s16_s10, [#allocation3]  }
  0x12   :  { %118 = dma.done.wait [#allocation3], 16  }
  0x13   :  { %119 = vsyncadd [#allocation3], 4294967280  ;;  %v24_v0 = vld [vmem:[#allocation2] sm:$0x1]  ;;  %s123_s0 = smov [#allocation5]  }
  0x14   :  { %v29_v1 = vand.u32 2147483647, %v24_v0  ;;  %v25_v7 = vld [vmem:[%s167_s1] sm:$0x1]  ;;  %v26_v9 = vmax.f32 %v24_v0, 0.0  ;;  %s57_s24 = sshll.u32 %s123_s0, 4  ;;  %s58_s24 = int_to_ptr.vmem [resolvable:$true] %s57_s24 }
  0x15   :  { %v27_v10 = vmul.f32 %v25_v7, %v24_v0  ;;  %s96_s1 = scalar_lea.vmem %s58_s24, 16  ;;  %s100_s25 = scalar_lea.vmem %s58_s24, 32 }
  0x16   :  { %v30_v2 = vsub.f32 0.0, %v29_v1  ;;  %p97_p8 = scmp.ne.s32.totalorder %s58_s24, %s96_s1  ;;  %p101_p9 = scmp.lt.s32.totalorder %s58_s24, %s58_s24 }
  0x17   :  { %v28_v14 = vsub.f32 %v26_v9, %v27_v10  ;;  %p102_p10 = scmp.lt.s32.totalorder %s100_s25, %s96_s1 }
  0x18   :  { %v31_v3 = vmul.f32 1.442695, %v30_v2 }
  0x19   :  { %p103_p11 = por %p102_p10, %p101_p9 }
  0x1a   :  { %68 = vpow2.f32 %v31_v3 }
  0x1b   :  { %p104_p12 = pnand %p103_p11, %p97_p8 }
  0x24   :  { %v69_v4 = vpop.eup %68 }
  0x25   :  { %v33_v5 = vadd.f32 1.0, %v69_v4  ;;  %v36_v6 = vmul.f32 -0.5, %v69_v4  ;;  %v39_v11 = vand.u32 2147483647, %v69_v4 }
  0x27   :  { %70 = vlog2.f32 %v33_v5  ;;  %v37_v8 = vadd.f32 1.0, %v36_v6  ;;  %vm40_vm0 = vcmp.lt.f32.partialorder %v39_v11, 0.0004427343 }
  0x29   :  { %v38_v12 = vmul.f32 %v69_v4, %v37_v8 }
  0x31   :  { %v71_v13 = vpop.eup %70 }
  0x32   :  { %v35_v15 = vmul.f32 0.6931472, %v71_v13 }
  0x34   :  { %v41_v16 = vsel %vm40_vm0, %v38_v12, %v35_v15 }
  0x35   :  { %v42_v17 = vadd.f32 %v41_v16, %v28_v14 }
  0x37   :  { %v43_v18 = vsub.f32 0.0, %v42_v17 }
  0x39   :  { %v44_v19 = vmul.f32 1.442695, %v43_v18 }
  0x3b   :  { %72 = vpow2.f32 %v44_v19 }
  0x45   :  { %v73_v20 = vpop.eup %72 }
  0x46   :  { %v46_v21 = vsub.f32 1.0, %v73_v20 }
  0x48   :  { %v47_v22 = vmul.f32 %v46_v21, %v46_v21 }
  0x4a   :  { %v48_v23 = vmul.f32 %v47_v22, %v42_v17 }
  0x4c   :  { %50 = vst [vmem:[#allocation5] sm:$0x1] %v48_v23 }
  0x4d   :  { %107 = shalt.err (!%p104_p12)
}
  0x4e   :  { %s108_s28 = scalar_lea.hbm %s168_s2, 16 }
  0x4f   :  { %p109_p13 = scmp.ne.s32.totalorder %s168_s2, %s108_s28  ;;  %p112_p0 = scmp.lt.u32.totalorder %s108_s28, %s168_s2 }
  0x51   :  { %p114_p1 = pnand %p112_p0, %p109_p13 }
  0x53   :  { %117 = shalt.err (!%p114_p1)
}
  0x54   :  { %60 = dma.vmem_to_hbm [thread:$0]  %s58_s24, 16, %s168_s2, [#allocation4]  }
  0x55   :  { %120 = dma.done.wait [#allocation4], 16  }
  0x56   :  { %121 = vsyncadd [#allocation4], 4294967280 }
  0x57   :  { %64 = vsyncpa [#allocation3], 1 }
  0x58   :  { %65 = vsyncpa [#allocation4], 1 }

</bundles_post_ra>
